<compile_context>
chip_gen: v7x
topology: tpu7x:2x2x1
jax: 0.10.0
libtpu: 0.0.40
codegen_flags: <defaults>
</compile_context>

<pallas_src>
import jax
import jax.numpy as jnp
from jax.experimental import pallas as pl
from jax.experimental.pallas import tpu as pltpu


# ---------------------------------------------------------------------------
# Stage 1: time-batched input projection  xg = x @ W_i2h + (b_i2h + b_h2h)
# ---------------------------------------------------------------------------
def input_proj_kernel(x_ref, w_ref, b_ref, out_ref):
    out_ref[...] = (
        jnp.dot(x_ref[...], w_ref[...], preferred_element_type=jnp.float32)
        + b_ref[...]
    ).astype(out_ref.dtype)


def _round_up(x, m):
    return (x + m - 1) // m * m


def _input_projection(x2d, wi, b, *, tile_cap=1024):
    """[M, H] @ [H, 4H] + b, M-tiled. Pads M to a tile multiple if needed."""
    M, H = x2d.shape
    H4 = wi.shape[1]

    if M <= tile_cap:
        tm, M_pad = M, M                 # whole-M block (full dims exempt from (8,128))
    else:
        tm = 512
        M_pad = _round_up(M, tm)
        if M_pad != M:
            x2d = jnp.pad(x2d, ((0, M_pad - M), (0, 0)))

    xg = pl.pallas_call(
        input_proj_kernel,
        out_shape=jax.ShapeDtypeStruct((M_pad, H4), jnp.float32),
        grid_spec=pltpu.PrefetchScalarGridSpec(
            num_scalar_prefetch=0,
            grid=(M_pad // tm,),
            in_specs=[
                pl.BlockSpec((tm, H), lambda m: (m, 0)),
                pl.BlockSpec((H, H4), lambda m: (0, 0)),    # weight resident
                pl.BlockSpec((1, H4), lambda m: (0, 0)),    # fused bias resident
            ],
            out_specs=pl.BlockSpec((tm, H4), lambda m: (m, 0)),
        ),
        compiler_params=pltpu.CompilerParams(
            dimension_semantics=("parallel",),
            vmem_limit_bytes=64 * 1024 * 1024,
        ),
        cost_estimate=pl.CostEstimate(
            flops=2 * M_pad * H * H4,
            transcendentals=0,
            bytes_accessed=int(x2d.size * x2d.dtype.itemsize
                               + wi.size * wi.dtype.itemsize
                               + M_pad * H4 * 4),
        ),
    )(x2d, wi, b)
    return xg[:M] if M_pad != M else xg


# ---------------------------------------------------------------------------
# Stage 2: weight-resident recurrence over grid=(B_tiles, T)
# ---------------------------------------------------------------------------
def lstm_seq_kernel(xg_ref, c0_ref, h0_ref, wh_ref, cy_ref, hy_ref, c_sc, h_sc):
    t = pl.program_id(1)

    @pl.when(t == 0)
    def _():
        c_sc[...] = c0_ref[...].astype(jnp.float32)
        h_sc[...] = h0_ref[...].astype(jnp.float32)

    H = c_sc.shape[-1]

    # Recurrent contribution h_{t-1} @ W_h2h: bf16 (or f32) operands, f32 accumulate,
    # added to the precomputed input-projection gates (already include both biases).
    gates = xg_ref[0] + jnp.dot(
        h_sc[...].astype(wh_ref.dtype), wh_ref[...],
        preferred_element_type=jnp.float32,
    )  # [tb, 4H], f32

    # Gate elementwise math kept in f32; slices are 128-lane aligned (H % 128 == 0).
    ingate     = jax.nn.sigmoid(gates[:, 0 * H:1 * H])
    forgetgate = jax.nn.sigmoid(gates[:, 1 * H:2 * H])
    cellgate   = jnp.tanh(       gates[:, 2 * H:3 * H])
    outgate    = jax.nn.sigmoid(gates[:, 3 * H:4 * H])
    # TODO(synk): opt.dropoutrec > 0 path (nn.Dropout on cellgate) not applied (eval mode).

    cy = forgetgate * c_sc[...] + ingate * cellgate
    hy = outgate * jnp.tanh(cy)

    # Carry state in VMEM scratch across time steps; emit per-step outputs.
    c_sc[...] = cy
    h_sc[...] = hy
    cy_ref[0] = cy.astype(cy_ref.dtype)
    hy_ref[0] = hy.astype(hy_ref.dtype)


def _choose_batch_tile(B, cap=256):
    """Largest multiple-of-8 divisor of B that is <= cap; whole B if it is small."""
    if B <= cap:
        return B
    for tb in range(cap - cap % 8, 0, -8):
        if B % tb == 0:
            return tb
    return B


# ---------------------------------------------------------------------------
# Wrappers
# ---------------------------------------------------------------------------
def lstm_sequence(x_seq, c0, h0, w_i2h, b_i2h, w_h2h, b_h2h,
                  *, matmul_dtype=jnp.bfloat16):
    """Runs the LSTM cell over a whole sequence.

    x_seq: [T, B, H]; c0, h0: [B, H]; w_*: [H, 4H] (pre-transposed); b_*: [1, 4H].
    Returns (cy_seq, hy_seq), each [T, B, H].
    """
    T, B, H = x_seq.shape
    M = T * B

    # Pre-sum biases on host (saves one broadcast add per step) and cast matmul
    # operands to the matmul dtype (f32 accumulation kept inside the kernels).
    b = (b_i2h + b_h2h).astype(jnp.float32).reshape(1, 4 * H)
    wi = w_i2h.astype(matmul_dtype)
    wh = w_h2h.astype(matmul_dtype)
    x2d = x_seq.reshape(M, H).astype(matmul_dtype)

    # ---- Stage 1: one large input-projection matmul (M = T*B rows). ----
    xg = _input_projection(x2d, wi, b).reshape(T, B, 4 * H)

    # ---- Stage 2: weight-resident recurrence; batch-tiled, serial over time. ----
    tb = _choose_batch_tile(B)
    nb = B // tb
    grid_spec = pltpu.PrefetchScalarGridSpec(
        num_scalar_prefetch=0,
        grid=(nb, T),                                          # batch outer, time inner
        in_specs=[
            pl.BlockSpec((1, tb, 4 * H), lambda bi, t: (t, bi, 0)),  # precomputed gates
            pl.BlockSpec((tb, H), lambda bi, t: (bi, 0)),            # c0 (resident per tile)
            pl.BlockSpec((tb, H), lambda bi, t: (bi, 0)),            # h0 (resident per tile)
            pl.BlockSpec((H, 4 * H), lambda bi, t: (0, 0)),          # W_h2h resident in VMEM
        ],
        out_specs=(
            pl.BlockSpec((1, tb, H), lambda bi, t: (t, bi, 0)),
            pl.BlockSpec((1, tb, H), lambda bi, t: (t, bi, 0)),
        ),
        scratch_shapes=[
            pltpu.VMEM((tb, H), jnp.float32),   # carried cell state
            pltpu.VMEM((tb, H), jnp.float32),   # carried hidden state
        ],
    )
    cy_seq, hy_seq = pl.pallas_call(
        lstm_seq_kernel,
        out_shape=(
            jax.ShapeDtypeStruct((T, B, H), x_seq.dtype),
            jax.ShapeDtypeStruct((T, B, H), x_seq.dtype),
        ),
        grid_spec=grid_spec,
        compiler_params=pltpu.CompilerParams(
            # Batch tiles are independent (megacore-shardable); time carries state.
            dimension_semantics=("parallel", "arbitrary"),
            vmem_limit_bytes=64 * 1024 * 1024,
        ),
        cost_estimate=pl.CostEstimate(
            flops=int(T * (2 * B * H * 4 * H + 10 * B * H)),
            transcendentals=int(5 * T * B * H),
            bytes_accessed=int(wh.size * wh.dtype.itemsize
                               + xg.size * 4
                               + 2 * T * B * H * 4
                               + 2 * B * H * 4),
        ),
    )(xg, c0.astype(jnp.float32), h0.astype(jnp.float32), wh)
    return cy_seq, hy_seq


def lstm_cell(x, prev_c, prev_h, w_i2h, b_i2h, w_h2h, b_h2h, **kw):
    """Single-step API matching the original nn.Module forward: (cy, hy)."""
    cy_seq, hy_seq = lstm_sequence(x[None], prev_c, prev_h,
                                   w_i2h, b_i2h, w_h2h, b_h2h, **kw)
    return cy_seq[0], hy_seq[0]


# ---------------------------------------------------------------------------
# Pure-JAX references (same math as the PyTorch module)
# ---------------------------------------------------------------------------
def _cell_reference(x, prev_c, prev_h, w_i2h, b_i2h, w_h2h, b_h2h):
    gates = x @ w_i2h + b_i2h + prev_h @ w_h2h + b_h2h
    H = x.shape[1]
    i = jax.nn.sigmoid(gates[:, 0 * H:1 * H])
    f = jax.nn.sigmoid(gates[:, 1 * H:2 * H])
    g = jnp.tanh(gates[:, 2 * H:3 * H])
    o = jax.nn.sigmoid(gates[:, 3 * H:4 * H])
    cy = f * prev_c + i * g
    hy = o * jnp.tanh(cy)
    return cy, hy


def _sequence_reference(x_seq, c0, h0, w_i2h, b_i2h, w_h2h, b_h2h,
                        matmul_dtype=jnp.float32):
    """Step-by-step reference with the same precision policy as the kernel."""
    T, B, H = x_seq.shape
    b = (b_i2h + b_h2h).astype(jnp.float32)
    wi = w_i2h.astype(matmul_dtype)
    wh = w_h2h.astype(matmul_dtype)
    c, h = c0, h0
    cs, hs = [], []
    for t in range(T):
        gates = (
            jnp.dot(x_seq[t].astype(matmul_dtype), wi,
                    preferred_element_type=jnp.float32)
            + jnp.dot(h.astype(matmul_dtype), wh,
                      preferred_element_type=jnp.float32)
            + b
        )
        i = jax.nn.sigmoid(gates[:, 0 * H:1 * H])
        f = jax.nn.sigmoid(gates[:, 1 * H:2 * H])
        g = jnp.tanh(gates[:, 2 * H:3 * H])
        o = jax.nn.sigmoid(gates[:, 3 * H:4 * H])
        c = f * c + i * g
        h = o * jnp.tanh(c)
        cs.append(c)
        hs.append(h)
    return jnp.stack(cs), jnp.stack(hs)


if __name__ == "__main__":
    T, B, H = 8, 8, 128  # small, (8,128)-aligned; H multiple of 128 keeps gate slices lane-aligned

    key = jax.random.PRNGKey(0)
    kx, kc, kh, kwi, kbi, kwh, kbh = jax.random.split(key, 7)

    x_seq = jax.random.normal(kx, (T, B, H), dtype=jnp.float32)
    c0 = jax.random.normal(kc, (B, H), dtype=jnp.float32)
    h0 = jax.random.normal(kh, (B, H), dtype=jnp.float32)

    # Deterministic parameter init mimicking nn.Linear(hidden, 4*hidden):
    # uniform(-1/sqrt(H), 1/sqrt(H)); stored pre-transposed as [H, 4H].
    bound = 1.0 / jnp.sqrt(jnp.float32(H))
    w_i2h = jax.random.uniform(kwi, (H, 4 * H), jnp.float32, -bound, bound)
    b_i2h = jax.random.uniform(kbi, (1, 4 * H), jnp.float32, -bound, bound)
    w_h2h = jax.random.uniform(kwh, (H, 4 * H), jnp.float32, -bound, bound)
    b_h2h = jax.random.uniform(kbh, (1, 4 * H), jnp.float32, -bound, bound)

    # --- f32 matmul path: must match the plain-f32 reference closely. ---
    cy32, hy32 = lstm_sequence(x_seq, c0, h0, w_i2h, b_i2h, w_h2h, b_h2h,
                               matmul_dtype=jnp.float32)
    jax.block_until_ready((cy32, hy32))
    cy_ref32, hy_ref32 = _sequence_reference(x_seq, c0, h0, w_i2h, b_i2h,
                                             w_h2h, b_h2h, jnp.float32)
    assert jnp.allclose(cy32, cy_ref32, atol=2e-4, rtol=2e-4)
    assert jnp.allclose(hy32, hy_ref32, atol=2e-4, rtol=2e-4)

    # --- bf16 matmul path (default / fast path): compare to matched-precision ref. ---
    cybf, hybf = lstm_sequence(x_seq, c0, h0, w_i2h, b_i2h, w_h2h, b_h2h)
    jax.block_until_ready((cybf, hybf))
    cy_refbf, hy_refbf = _sequence_reference(x_seq, c0, h0, w_i2h, b_i2h,
                                             w_h2h, b_h2h, jnp.bfloat16)
    assert jnp.allclose(cybf, cy_refbf, atol=2e-3, rtol=2e-3)
    assert jnp.allclose(hybf, hy_refbf, atol=2e-3, rtol=2e-3)

    # --- Single-step API equivalent to the original module forward. ---
    cy1, hy1 = lstm_cell(x_seq[0], c0, h0, w_i2h, b_i2h, w_h2h, b_h2h,
                         matmul_dtype=jnp.float32)
    jax.block_until_ready((cy1, hy1))
    cy1_ref, hy1_ref = _cell_reference(x_seq[0], c0, h0, w_i2h, b_i2h, w_h2h, b_h2h)
    assert jnp.allclose(cy1, cy1_ref, atol=1e-4, rtol=1e-4)
    assert jnp.allclose(hy1, hy1_ref, atol=1e-4, rtol=1e-4)

    print("KERNEL_OK")
</pallas_src>

<mosaic_0001>
module attributes {stable_mosaic.version = 11 : i64} {
  func.func @input_proj_kernel(%arg0: i32, %arg1: memref<64x128xf32, #tpu.memory_space<vmem>>, %arg2: memref<128x512xf32, #tpu.memory_space<vmem>>, %arg3: memref<1x512xf32, #tpu.memory_space<vmem>>, %arg4: memref<64x512xf32, #tpu.memory_space<vmem>>) attributes {dimension_semantics = [#tpu.dimension_semantics<parallel>], iteration_bounds = array<i64: 1>, scalar_prefetch = 0 : i64, scratch_operands = 0 : i64, tpu.core_type = #tpu.core_type<tc>, window_params = [{transform_indices = @transform_0, window_bounds = array<i64: 64, 128>}, {pipeline_mode = #tpu.pipeline_mode<synchronous>, transform_indices = @transform_1, window_bounds = array<i64: 128, 512>}, {pipeline_mode = #tpu.pipeline_mode<synchronous>, transform_indices = @transform_2, window_bounds = array<i64: 1, 512>}, {transform_indices = @transform_3, window_bounds = array<i64: 64, 512>}]} {
    %c0 = arith.constant 0 : index
    %c0_0 = arith.constant 0 : index
    %0 = vector.load %arg1[%c0, %c0_0] : memref<64x128xf32, #tpu.memory_space<vmem>>, vector<64x128xf32>
    %c0_1 = arith.constant 0 : index
    %c0_2 = arith.constant 0 : index
    %1 = vector.load %arg2[%c0_1, %c0_2] : memref<128x512xf32, #tpu.memory_space<vmem>>, vector<128x512xf32>
    %cst = arith.constant dense<0.000000e+00> : vector<64x512xf32>
    %2 = tpu.matmul %0, %1, %cst {dimension_numbers = #tpu.dot_dimension_numbers<[1], [0], [0], [1], [0, 0, 1, 1], [], []>} : vector<64x128xf32>, vector<128x512xf32>, vector<64x512xf32> -> vector<64x512xf32>
    %c0_3 = arith.constant 0 : index
    %c0_4 = arith.constant 0 : index
    %3 = vector.load %arg3[%c0_3, %c0_4] : memref<1x512xf32, #tpu.memory_space<vmem>>, vector<1x512xf32>
    %4 = vector.broadcast %3 : vector<1x512xf32> to vector<64x512xf32>
    %5 = arith.addf %2, %4 : vector<64x512xf32>
    %c0_5 = arith.constant 0 : index
    %c0_6 = arith.constant 0 : index
    %6 = vector.load %arg4[%c0_5, %c0_6] : memref<64x512xf32, #tpu.memory_space<vmem>>, vector<64x512xf32>
    tpu.vector_store %arg4[%c0_5, %c0_6], %5 {strides = array<i32>} : memref<64x512xf32, #tpu.memory_space<vmem>>, vector<64x512xf32>,
    return
  }
  func.func @transform_0(%arg0: i32) -> (i32, i32) {
    %c0_i32 = arith.constant 0 : i32
    %c0_i32_0 = arith.constant 0 : i32
    return %arg0, %c0_i32 : i32, i32
  }
  func.func @transform_1(%arg0: i32) -> (i32, i32) {
    %c0_i32 = arith.constant 0 : i32
    %c0_i32_0 = arith.constant 0 : i32
    %c0_i32_1 = arith.constant 0 : i32
    return %c0_i32, %c0_i32_0 : i32, i32
  }
  func.func @transform_2(%arg0: i32) -> (i32, i32) {
    %c0_i32 = arith.constant 0 : i32
    %c0_i32_0 = arith.constant 0 : i32
    %c0_i32_1 = arith.constant 0 : i32
    return %c0_i32, %c0_i32_0 : i32, i32
  }
  func.func @transform_3(%arg0: i32) -> (i32, i32) {
    %c0_i32 = arith.constant 0 : i32
    %c0_i32_0 = arith.constant 0 : i32
    return %arg0, %c0_i32 : i32, i32
  }
}

</mosaic_0001>

<bundles_post_ra>
// kernel: tpu_custom_call.1
= control target key start
LH: loop header
LB: loop body
LE: loop exit
PB: predicated region body
PF: predicated region fallthrough
CT: control target
= control target key end

     0   :  { %8 = vsyncpa [#allocation3], 0  ;;  %s730_s0 = inlined_call_operand.hbm [shape: f32[64,128], index: 0, kind: input, shape index: {}]   ;;  %s731_s1 = inlined_call_operand.hbm [shape: f32[128,512], index: 1, kind: input, shape index: {}]   ;;  %s732_s2 = inlined_call_operand.hbm [shape: f32[1,512], index: 2, kind: input, shape index: {}]   ;;  %s733_s3 = inlined_call_operand.hbm [shape: f32[64,512], index: 3, kind: output, shape index: {}]  }
   0x1   :  { %9 = vsyncpa [#allocation6], 0 }
   0x2   :  { %10 = vsyncpa [#allocation4], 0  ;;  %s591_s12 = smov [#allocation5]   ;;  %s497_s16 = scalar_lea.hbm %s731_s1, 8192 }
   0x3   :  { %s28_s13 = sshll.u32 %s591_s12, 4  ;;  %p498_p0 = scmp.ne.s32.totalorder %s731_s1, %s497_s16  ;;  %s29_s13 = int_to_ptr.vmem [resolvable:$true] %s28_s13 }
   0x4   :  { %p501_p1 = scmp.lt.u32.totalorder %s497_s16, %s731_s1 }
   0x6   :  { %p503_p2 = pnand %p501_p1, %p498_p0 }
   0x8   :  { %506 = shalt.err (!%p503_p2)
}
   0x9   :  { %s507_s21 = scalar_lea.vmem %s29_s13, 8192  ;;  %p512_p4 = scmp.lt.s32.totalorder %s29_s13, %s29_s13 }
   0xa   :  { %p508_p3 = scmp.ne.s32.totalorder %s29_s13, %s507_s21  ;;  %p513_p5 = scmp.lt.s32.totalorder %s507_s21, %s507_s21 }
   0xc   :  { %p514_p6 = por %p513_p5, %p512_p4 }
   0xe   :  { %p515_p7 = pnand %p514_p6, %p508_p3 }
  0x10   :  { %518 = shalt.err (!%p515_p7)
}
  0x11   :  { %s592_s22 = smov 512   ;;  %s593_s23 = smov 32  }
  0x12   :  { %34 = dma.hbm_to_vmem [thread:$0]  %s731_s1, 8192, %s29_s13, [#allocation6], %s592_s22, %s592_s22, %s593_s23  }
  0x13   :  { %s594_s26 = smov [#allocation2]   ;;  %s519_s30 = scalar_lea.hbm %s730_s0, 1024 }
  0x14   :  { %s16_s27 = sshll.u32 %s594_s26, 4  ;;  %p520_p8 = scmp.ne.s32.totalorder %s730_s0, %s519_s30  ;;  %s17_s27 = int_to_ptr.vmem [resolvable:$true] %s16_s27 }
  0x15   :  { %p523_p9 = scmp.lt.u32.totalorder %s519_s30, %s730_s0 }
  0x17   :  { %p525_p10 = pnand %p523_p9, %p520_p8 }
  0x19   :  { %528 = shalt.err (!%p525_p10)
}
  0x1a   :  { %s529_s8 = scalar_lea.vmem %s17_s27, 1024  ;;  %p534_p12 = scmp.lt.s32.totalorder %s17_s27, %s17_s27 }
  0x1b   :  { %p530_p11 = scmp.ne.s32.totalorder %s17_s27, %s529_s8  ;;  %p535_p13 = scmp.lt.s32.totalorder %s529_s8, %s529_s8 }
  0x1d   :  { %p536_p0 = por %p535_p13, %p534_p12 }
  0x1f   :  { %p537_p1 = pnand %p536_p0, %p530_p11 }
  0x21   :  { %540 = shalt.err (!%p537_p1)
}
  0x22   :  { %s595_s1 = smov 128   ;;  %s596_s9 = smov 8  }
  0x23   :  { %22 = dma.hbm_to_vmem [thread:$0]  %s730_s0, 1024, %s17_s27, [#allocation3], %s595_s1, %s595_s1, %s596_s9  }
  0x24   :  { %s597_s12 = smov [#allocation7]   ;;  %s541_s16 = scalar_lea.hbm %s732_s2, 64 }
  0x25   :  { %s41_s13 = sshll.u32 %s597_s12, 4  ;;  %p542_p2 = scmp.ne.s32.totalorder %s732_s2, %s541_s16  ;;  %s42_s13 = int_to_ptr.vmem [resolvable:$true] %s41_s13 }
  0x26   :  { %p545_p3 = scmp.lt.u32.totalorder %s541_s16, %s732_s2 }
  0x28   :  { %p547_p4 = pnand %p545_p3, %p542_p2 }
  0x2a   :  { %550 = shalt.err (!%p547_p4)
}
  0x2b   :  { %s551_s21 = scalar_lea.vmem %s42_s13, 64  ;;  %p556_p6 = scmp.lt.s32.totalorder %s42_s13, %s42_s13 }
  0x2c   :  { %p552_p5 = scmp.ne.s32.totalorder %s42_s13, %s551_s21  ;;  %p557_p7 = scmp.lt.s32.totalorder %s551_s21, %s551_s21 }
  0x2e   :  { %p558_p8 = por %p557_p7, %p556_p6 }
  0x30   :  { %p559_p9 = pnand %p558_p8, %p552_p5 }
  0x32   :  { %562 = shalt.err (!%p559_p9)
}
  0x33   :  { %44 = dma.hbm_to_vmem [thread:$0]  %s732_s2, 64, %s42_s13, [#allocation6]  }
  0x34   :  { %585 = dma.done.wait [#allocation3], 1024  }
  0x35   :  { %586 = vsyncadd [#allocation3], 4294966272 }
  0x36   :  { %587 = dma.done.wait [#allocation6], 8256  }
  0x37   :  { %588 = vsyncadd [#allocation6], 4294959040  ;;  %v598_v0 = vmov 0.0   ;;  %v63_v1 = vld [vmem:[#allocation5 + $0x8] sm:$0xff]  ;;  %v65_v3 = vld [vmem:[#allocation5 + $0x18] sm:$0xff]  ;;  %s599_s2 = smov [#allocation8]  }
  0x38   :  { %212 = vmatprep.mubr.f32.mxu0 %v598_v0  ;;  %325 = vmatprep.mubr.f32.mxu1 %v598_v0  ;;  %v67_v2 = vld [vmem:[#allocation5 + $0x28] sm:$0xff]  ;;  %v69_v5 = vld [vmem:[#allocation5 + $0x38] sm:$0xff]  ;;  %v62_v6 = vld [vmem:[#allocation5] sm:$0xff]  ;;  %s411_s25 = sshll.u32 %s599_s2, 4  ;;  %s412_s25 = int_to_ptr.vmem [resolvable:$true] %s411_s25 }
  0x39   :  { %v424_v4 = vpack.c.bf16 %v67_v2, %v63_v1  ;;  %v66_v7 = vld [vmem:[#allocation5 + $0x20] sm:$0xff]  ;;  %v456_v8 = vpack.c.bf16 %v69_v5, %v65_v3  ;;  %v64_v10 = vld [vmem:[#allocation5 + $0x10] sm:$0xff]  ;;  %v71_v12 = vld [vmem:[#allocation5 + $0x48] sm:$0xff]  ;;  %s563_s26 = scalar_lea.vmem %s412_s25, 4096  ;;  %p568_p11 = scmp.lt.s32.totalorder %s412_s25, %s412_s25 }
  0x3a   :  { %v426_v9 = vpack.c.bf16 %v66_v7, %v62_v6  ;;  %v68_v11 = vld [vmem:[#allocation5 + $0x30] sm:$0xff]  ;;  %v75_v14 = vld [vmem:[#allocation5 + $0x68] sm:$0xff]  ;;  %v73_v15 = vld [vmem:[#allocation5 + $0x58] sm:$0xff]  ;;  %p564_p10 = scmp.ne.s32.totalorder %s412_s25, %s563_s26  ;;  %p569_p12 = scmp.lt.s32.totalorder %s563_s26, %s563_s26 }
  0x3b   :  { %425 = vmatprep.subr.bf16.mxu0 %v424_v4  ;;  %v458_v13 = vpack.c.bf16 %v68_v11, %v64_v10  ;;  %v77_v16 = vld [vmem:[#allocation5 + $0x78] sm:$0xff]  ;;  %457 = vmatprep.subr.bf16.mxu1 %v456_v8  ;;  %v428_v17 = vpack.c.bf16 %v75_v14, %v71_v12  ;;  %v70_v19 = vld [vmem:[#allocation5 + $0x40] sm:$0xff]  ;;  %v72_v21 = vld [vmem:[#allocation5 + $0x50] sm:$0xff] }
  0x3c   :  { %427 = vmatpush1.bf16.msra.mxu0 %v426_v9  ;;  %v460_v18 = vpack.c.bf16 %v77_v16, %v73_v15  ;;  %v74_v20 = vld [vmem:[#allocation5 + $0x60] sm:$0xff]  ;;  %v76_v23 = vld [vmem:[#allocation5 + $0x70] sm:$0xff]  ;;  %v79_v24 = vld [vmem:[#allocation5 + $0x88] sm:$0xff]  ;;  %p570_p13 = por %p569_p12, %p568_p11 }
  0x3d   :  { %459 = vmatpush1.bf16.msra.mxu1 %v458_v13  ;;  %v430_v22 = vpack.c.bf16 %v74_v20, %v70_v19  ;;  %v83_v25 = vld [vmem:[#allocation5 + $0xa8] sm:$0xff]  ;;  %429 = vmatprep.subr.bf16.mxu0 %v428_v17  ;;  %v462_v26 = vpack.c.bf16 %v76_v23, %v72_v21  ;;  %v81_v28 = vld [vmem:[#allocation5 + $0x98] sm:$0xff]  ;;  %v78_v30 = vld [vmem:[#allocation5 + $0x80] sm:$0xff] }
  0x3e   :  { %461 = vmatprep.subr.bf16.mxu1 %v460_v18  ;;  %v432_v27 = vpack.c.bf16 %v83_v25, %v79_v24  ;;  %v85_v29 = vld [vmem:[#allocation5 + $0xb8] sm:$0xff]  ;;  %v82_v32 = vld [vmem:[#allocation5 + $0xa0] sm:$0xff]  ;;  %v80_v33 = vld [vmem:[#allocation5 + $0x90] sm:$0xff]  ;;  %p571_p0 = pnand %p570_p13, %p564_p10 }
  0x3f   :  { %v464_v31 = vpack.c.bf16 %v85_v29, %v81_v28  ;;  %v84_v34 = vld [vmem:[#allocation5 + $0xb0] sm:$0xff]  ;;  %v434_v35 = vpack.c.bf16 %v82_v32, %v78_v30  ;;  %v87_v36 = vld [vmem:[#allocation5 + $0xc8] sm:$0xff]  ;;  %v89_v38 = vld [vmem:[#allocation5 + $0xd8] sm:$0xff] }
  0x40   :  { %431 = vmatpush1.bf16.msra.mxu0 %v430_v22  ;;  %v91_v37 = vld [vmem:[#allocation5 + $0xe8] sm:$0xff]  ;;  %v466_v39 = vpack.c.bf16 %v84_v34, %v80_v33  ;;  %v93_v41 = vld [vmem:[#allocation5 + $0xf8] sm:$0xff]  ;;  %v86_v42 = vld [vmem:[#allocation5 + $0xc0] sm:$0xff] }
  0x41   :  { %463 = vmatpush1.bf16.msra.mxu1 %v462_v26  ;;  %433 = vmatprep.subr.bf16.mxu0 %v432_v27  ;;  %v436_v40 = vpack.c.bf16 %v91_v37, %v87_v36  ;;  %v90_v43 = vld [vmem:[#allocation5 + $0xe0] sm:$0xff]  ;;  %v468_v44 = vpack.c.bf16 %v93_v41, %v89_v38  ;;  %v88_v45 = vld [vmem:[#allocation5 + $0xd0] sm:$0xff]  ;;  %v95_v47 = vld [vmem:[#allocation5 + $0x108] sm:$0xff] }
  0x42   :  { %465 = vmatprep.subr.bf16.mxu1 %v464_v31  ;;  %v92_v46 = vld [vmem:[#allocation5 + $0xf0] sm:$0xff]  ;;  %v99_v48 = vld [vmem:[#allocation5 + $0x128] sm:$0xff]  ;;  %v97_v49 = vld [vmem:[#allocation5 + $0x118] sm:$0xff]  ;;  %v438_v51 = vpack.c.bf16 %v90_v43, %v86_v42  ;;  %v128_v42 = vlaneseq }
  0x43   :  { %v101_v50 = vld [vmem:[#allocation5 + $0x138] sm:$0xff]  ;;  %v470_v52 = vpack.c.bf16 %v92_v46, %v88_v45  ;;  %v440_v53 = vpack.c.bf16 %v99_v48, %v95_v47  ;;  %v94_v54 = vld [vmem:[#allocation5 + $0x100] sm:$0xff]  ;;  %v96_v56 = vld [vmem:[#allocation5 + $0x110] sm:$0xff] }
  0x44   :  { %435 = vmatpush1.bf16.msra.mxu0 %v434_v35  ;;  %v98_v55 = vld [vmem:[#allocation5 + $0x120] sm:$0xff]  ;;  %v472_v57 = vpack.c.bf16 %v101_v50, %v97_v49  ;;  %v100_v58 = vld [vmem:[#allocation5 + $0x130] sm:$0xff]  ;;  %v103_v59 = vld [vmem:[#allocation5 + $0x148] sm:$0xff]  ;;  %v129_v43 = vshrl.u32 %v128_v42, 7 }
  0x45   :  { %467 = vmatpush1.bf16.msra.mxu1 %v466_v39  ;;  %437 = vmatprep.subr.bf16.mxu0 %v436_v40  ;;  %v107_v60 = vld [vmem:[#allocation5 + $0x168] sm:$0xff]  ;;  %v105_v61 = vld [vmem:[#allocation5 + $0x158] sm:$0xff]  ;;  %v442_v63 = vpack.c.bf16 %v98_v55, %v94_v54  ;;  %v474_v1 = vpack.c.bf16 %v100_v58, %v96_v56  ;;  %v102_v3 = vld [vmem:[#allocation5 + $0x140] sm:$0xff] }
  0x46   :  { %469 = vmatprep.subr.bf16.mxu1 %v468_v44  ;;  %v109_v62 = vld [vmem:[#allocation5 + $0x178] sm:$0xff]  ;;  %v444_v2 = vpack.c.bf16 %v107_v60, %v103_v59  ;;  %v106_v4 = vld [vmem:[#allocation5 + $0x160] sm:$0xff]  ;;  %v104_v5 = vld [vmem:[#allocation5 + $0x150] sm:$0xff]  ;;  %v130_v44 = vsub.s32 0, %v129_v43  ;;  %v138_v46 = vsub.s32 2, %v129_v43  ;;  %v134_v47 = vsub.s32 1, %v129_v43 }
  0x47   :  { %v476_v6 = vpack.c.bf16 %v109_v62, %v105_v61  ;;  %v108_v7 = vld [vmem:[#allocation5 + $0x170] sm:$0xff]  ;;  %v111_v8 = vld [vmem:[#allocation5 + $0x188] sm:$0xff]  ;;  %v113_v10 = vld [vmem:[#allocation5 + $0x198] sm:$0xff]  ;;  %v446_v12 = vpack.c.bf16 %v106_v4, %v102_v3  ;;  %v142_v48 = vsub.s32 3, %v129_v43 }
  0x48   :  { %439 = vmatpush1.bf16.msra.mxu0 %v438_v51  ;;  %v115_v9 = vld [vmem:[#allocation5 + $0x1a8] sm:$0xff]  ;;  %v117_v11 = vld [vmem:[#allocation5 + $0x1b8] sm:$0xff]  ;;  %v478_v13 = vpack.c.bf16 %v108_v7, %v104_v5  ;;  %v110_v15 = vld [vmem:[#allocation5 + $0x180] sm:$0xff] }
  0x49   :  { %471 = vmatpush1.bf16.msra.mxu1 %v470_v52  ;;  %441 = vmatprep.subr.bf16.mxu0 %v440_v53  ;;  %v448_v14 = vpack.c.bf16 %v115_v9, %v111_v8  ;;  %v114_v16 = vld [vmem:[#allocation5 + $0x1a0] sm:$0xff]  ;;  %v112_v17 = vld [vmem:[#allocation5 + $0x190] sm:$0xff]  ;;  %v480_v18 = vpack.c.bf16 %v117_v11, %v113_v10  ;;  %v119_v20 = vld [vmem:[#allocation5 + $0x1c8] sm:$0xff] }
  0x4a   :  { %473 = vmatprep.subr.bf16.mxu1 %v472_v57  ;;  %v116_v19 = vld [vmem:[#allocation5 + $0x1b0] sm:$0xff]  ;;  %v123_v21 = vld [vmem:[#allocation5 + $0x1e8] sm:$0xff]  ;;  %v121_v22 = vld [vmem:[#allocation5 + $0x1d8] sm:$0xff]  ;;  %v450_v24 = vpack.c.bf16 %v114_v16, %v110_v15 }
  0x4b   :  { %v125_v23 = vld [vmem:[#allocation5 + $0x1f8] sm:$0xff]  ;;  %v482_v25 = vpack.c.bf16 %v116_v19, %v112_v17  ;;  %v452_v26 = vpack.c.bf16 %v123_v21, %v119_v20  ;;  %v118_v27 = vld [vmem:[#allocation5 + $0x1c0] sm:$0xff]  ;;  %v120_v30 = vld [vmem:[#allocation5 + $0x1d0] sm:$0xff] }
  0x4c   :  { %443 = vmatpush1.bf16.msra.mxu0 %v442_v63  ;;  %v122_v28 = vld [vmem:[#allocation5 + $0x1e0] sm:$0xff]  ;;  %v484_v29 = vpack.c.bf16 %v125_v23, %v121_v22  ;;  %v124_v31 = vld [vmem:[#allocation5 + $0x1f0] sm:$0xff]  ;;  %v55_v35 = vld [vmem:[#allocation2 + $0x8] sm:$0xff] }
  0x4d   :  { %475 = vmatpush1.bf16.msra.mxu1 %v474_v1  ;;  %445 = vmatprep.subr.bf16.mxu0 %v444_v2  ;;  %v454_v32 = vpack.c.bf16 %v122_v28, %v118_v27  ;;  %v486_v33 = vpack.c.bf16 %v124_v31, %v120_v30  ;;  %v54_v34 = vld [vmem:[#allocation2] sm:$0xff]  ;;  %v56_v36 = vld [vmem:[#allocation2 + $0x10] sm:$0xff]  ;;  %v57_v37 = vld [vmem:[#allocation2 + $0x18] sm:$0xff] }
  0x4e   :  { %477 = vmatprep.subr.bf16.mxu1 %v476_v6  ;;  %v58_v38 = vld [vmem:[#allocation2 + $0x20] sm:$0xff]  ;;  %v59_v39 = vld [vmem:[#allocation2 + $0x28] sm:$0xff]  ;;  %v60_v40 = vld [vmem:[#allocation2 + $0x30] sm:$0xff] }
  0x4f   :  { %v61_v41 = vld [vmem:[#allocation2 + $0x38] sm:$0xff]  ;;  %v126_v45 = vld [vmem:[#allocation7] sm:$0xf] }
  0x50   :  { %447 = vmatpush1.bf16.msra.mxu0 %v446_v12  ;;  %v675_v49 = vrot.slane %v126_v45, %v130_v44  ;;  %v677_v50 = vrot.slane %v126_v45, %v138_v46  ;;  %v679_v51 = vrot.slane %v126_v45, %v134_v47  ;;  %v681_v52 = vrot.slane %v126_v45, %v142_v48 }
  0x51   :  { %479 = vmatpush1.bf16.msra.mxu1 %v478_v13  ;;  %449 = vmatprep.subr.bf16.mxu0 %v448_v14 }
  0x52   :  { %481 = vmatprep.subr.bf16.mxu1 %v480_v18 }
  0x54   :  { %451 = vmatpush1.bf16.msra.mxu0 %v450_v24 }
  0x55   :  { %483 = vmatpush1.bf16.msra.mxu1 %v482_v25  ;;  %453 = vmatprep.subr.bf16.mxu0 %v452_v26 }
  0x56   :  { %485 = vmatprep.subr.bf16.mxu1 %v484_v29 }
  0x58   :  { %455 = vmatpush1.bf16.msra.mxu0 %v454_v32 }
  0x59   :  { %487 = vmatpush1.bf16.msra.mxu1 %v486_v33 }
  0x5b   :  { %213 = vmatmul.mubr.f32.vlgmr.msra.gmra.mrb[0].mxu0 %v54_v34 }
  0x5c   :  { %326 = vmatmul.mubr.f32.vlgmr.msra.gmra.mrb[0].mxu1 %v54_v34  ;;  %218 = vmatprep.mubr.f32.mxu0 %v598_v0 }
  0x5d   :  { %331 = vmatprep.mubr.f32.mxu1 %v598_v0 }
  0x5f   :  { %219 = vmatmul.mubr.f32.gmra.mrb[2].mxu0 %v55_v35 }
  0x60   :  { %332 = vmatmul.mubr.f32.gmra.mrb[2].mxu1 %v55_v35  ;;  %224 = vmatprep.mubr.f32.mxu0 %v598_v0 }
  0x61   :  { %337 = vmatprep.mubr.f32.mxu1 %v598_v0 }
  0x63   :  { %225 = vmatmul.mubr.f32.gmra.mrb[4].mxu0 %v56_v36 }
  0x64   :  { %338 = vmatmul.mubr.f32.gmra.mrb[4].mxu1 %v56_v36  ;;  %230 = vmatprep.mubr.f32.mxu0 %v598_v0 }
  0x65   :  { %343 = vmatprep.mubr.f32.mxu1 %v598_v0 }
  0x67   :  { %231 = vmatmul.mubr.f32.gmra.mrb[6].mxu0 %v57_v37 }
  0x68   :  { %344 = vmatmul.mubr.f32.gmra.mrb[6].mxu1 %v57_v37  ;;  %236 = vmatprep.mubr.f32.mxu0 %v598_v0 }
  0x69   :  { %349 = vmatprep.mubr.f32.mxu1 %v598_v0 }
  0x6b   :  { %237 = vmatmul.mubr.f32.gmra.mrb[8].mxu0 %v58_v38 }
  0x6c   :  { %350 = vmatmul.mubr.f32.gmra.mrb[8].mxu1 %v58_v38  ;;  %242 = vmatprep.mubr.f32.mxu0 %v598_v0 }
  0x6d   :  { %355 = vmatprep.mubr.f32.mxu1 %v598_v0 }
  0x6f   :  { %243 = vmatmul.mubr.f32.gmra.mrb[10].mxu0 %v59_v39 }
  0x70   :  { %356 = vmatmul.mubr.f32.gmra.mrb[10].mxu1 %v59_v39  ;;  %248 = vmatprep.mubr.f32.mxu0 %v598_v0 }
  0x71   :  { %361 = vmatprep.mubr.f32.mxu1 %v598_v0 }
  0x73   :  { %249 = vmatmul.mubr.f32.gmra.mrb[12].mxu0 %v60_v40 }
  0x74   :  { %362 = vmatmul.mubr.f32.gmra.mrb[12].mxu1 %v60_v40  ;;  %254 = vmatprep.mubr.f32.mxu0 %v598_v0 }
  0x75   :  { %367 = vmatprep.mubr.f32.mxu1 %v598_v0 }
  0x77   :  { %255 = vmatmul.mubr.f32.gmra.mrb[14].mxu0 %v61_v41 }
  0x78   :  { %368 = vmatmul.mubr.f32.gmra.mrb[14].mxu1 %v61_v41 }
 0x12e   :  { %v214_v53 = vpop.f32.mrb[0].mxu0 }
 0x12f   :  { %v215_v0 = vadd.f32 %v214_v53, %v675_v49  ;;  %v327_v54 = vpop.f32.mrb[0].mxu1  ;;  %v216_v55 = vpop.f32.mrb[1].mxu0 }
 0x130   :  { %v328_v56 = vadd.f32 %v327_v54, %v677_v50  ;;  %v217_v57 = vadd.f32 %v216_v55, %v679_v51  ;;  %v329_v58 = vpop.f32.mrb[1].mxu1 }
 0x131   :  { %374 = vst [vmem:[#allocation8] sm:$0xff] %v215_v0  ;;  %v330_v59 = vadd.f32 %v329_v58, %v681_v52 }
 0x132   :  { %376 = vst [vmem:[#allocation8 + $0x10] sm:$0xff] %v328_v56  ;;  %375 = vst [vmem:[#allocation8 + $0x8] sm:$0xff] %v217_v57  ;;  %v220_v60 = vpop.f32.mrb[2].mxu0 }
 0x133   :  { %377 = vst [vmem:[#allocation8 + $0x18] sm:$0xff] %v330_v59  ;;  %v221_v61 = vadd.f32 %v220_v60, %v675_v49  ;;  %v333_v62 = vpop.f32.mrb[2].mxu1  ;;  %v222_v63 = vpop.f32.mrb[3].mxu0 }
 0x134   :  { %v334_v1 = vadd.f32 %v333_v62, %v677_v50  ;;  %v223_v2 = vadd.f32 %v222_v63, %v679_v51  ;;  %v335_v3 = vpop.f32.mrb[3].mxu1 }
 0x135   :  { %378 = vst [vmem:[#allocation8 + $0x20] sm:$0xff] %v221_v61  ;;  %v336_v4 = vadd.f32 %v335_v3, %v681_v52 }
 0x136   :  { %380 = vst [vmem:[#allocation8 + $0x30] sm:$0xff] %v334_v1  ;;  %379 = vst [vmem:[#allocation8 + $0x28] sm:$0xff] %v223_v2  ;;  %v226_v5 = vpop.f32.mrb[4].mxu0 }
 0x137   :  { %381 = vst [vmem:[#allocation8 + $0x38] sm:$0xff] %v336_v4  ;;  %v227_v6 = vadd.f32 %v226_v5, %v675_v49  ;;  %v339_v7 = vpop.f32.mrb[4].mxu1  ;;  %v228_v8 = vpop.f32.mrb[5].mxu0 }
 0x138   :  { %v340_v9 = vadd.f32 %v339_v7, %v677_v50  ;;  %v229_v10 = vadd.f32 %v228_v8, %v679_v51  ;;  %v341_v11 = vpop.f32.mrb[5].mxu1 }
 0x139   :  { %382 = vst [vmem:[#allocation8 + $0x40] sm:$0xff] %v227_v6  ;;  %v342_v12 = vadd.f32 %v341_v11, %v681_v52 }
 0x13a   :  { %384 = vst [vmem:[#allocation8 + $0x50] sm:$0xff] %v340_v9  ;;  %383 = vst [vmem:[#allocation8 + $0x48] sm:$0xff] %v229_v10  ;;  %v232_v13 = vpop.f32.mrb[6].mxu0 }
 0x13b   :  { %385 = vst [vmem:[#allocation8 + $0x58] sm:$0xff] %v342_v12  ;;  %v233_v14 = vadd.f32 %v232_v13, %v675_v49  ;;  %v345_v15 = vpop.f32.mrb[6].mxu1  ;;  %v234_v16 = vpop.f32.mrb[7].mxu0 }
 0x13c   :  { %v346_v17 = vadd.f32 %v345_v15, %v677_v50  ;;  %v235_v18 = vadd.f32 %v234_v16, %v679_v51  ;;  %v347_v19 = vpop.f32.mrb[7].mxu1 }
 0x13d   :  { %386 = vst [vmem:[#allocation8 + $0x60] sm:$0xff] %v233_v14  ;;  %v348_v20 = vadd.f32 %v347_v19, %v681_v52 }
 0x13e   :  { %388 = vst [vmem:[#allocation8 + $0x70] sm:$0xff] %v346_v17  ;;  %387 = vst [vmem:[#allocation8 + $0x68] sm:$0xff] %v235_v18  ;;  %v238_v21 = vpop.f32.mrb[8].mxu0 }
 0x13f   :  { %389 = vst [vmem:[#allocation8 + $0x78] sm:$0xff] %v348_v20  ;;  %v239_v22 = vadd.f32 %v238_v21, %v675_v49  ;;  %v351_v23 = vpop.f32.mrb[8].mxu1  ;;  %v240_v24 = vpop.f32.mrb[9].mxu0 }
 0x140   :  { %v352_v25 = vadd.f32 %v351_v23, %v677_v50  ;;  %v241_v26 = vadd.f32 %v240_v24, %v679_v51  ;;  %v353_v27 = vpop.f32.mrb[9].mxu1 }
 0x141   :  { %390 = vst [vmem:[#allocation8 + $0x80] sm:$0xff] %v239_v22  ;;  %v354_v28 = vadd.f32 %v353_v27, %v681_v52 }
 0x142   :  { %392 = vst [vmem:[#allocation8 + $0x90] sm:$0xff] %v352_v25  ;;  %391 = vst [vmem:[#allocation8 + $0x88] sm:$0xff] %v241_v26  ;;  %v244_v29 = vpop.f32.mrb[10].mxu0 }
 0x143   :  { %393 = vst [vmem:[#allocation8 + $0x98] sm:$0xff] %v354_v28  ;;  %v245_v30 = vadd.f32 %v244_v29, %v675_v49  ;;  %v357_v31 = vpop.f32.mrb[10].mxu1  ;;  %v246_v32 = vpop.f32.mrb[11].mxu0 }
 0x144   :  { %v358_v33 = vadd.f32 %v357_v31, %v677_v50  ;;  %v247_v34 = vadd.f32 %v246_v32, %v679_v51  ;;  %v359_v35 = vpop.f32.mrb[11].mxu1 }
 0x145   :  { %394 = vst [vmem:[#allocation8 + $0xa0] sm:$0xff] %v245_v30  ;;  %v360_v36 = vadd.f32 %v359_v35, %v681_v52 }
 0x146   :  { %396 = vst [vmem:[#allocation8 + $0xb0] sm:$0xff] %v358_v33  ;;  %395 = vst [vmem:[#allocation8 + $0xa8] sm:$0xff] %v247_v34  ;;  %v250_v37 = vpop.f32.mrb[12].mxu0 }
 0x147   :  { %397 = vst [vmem:[#allocation8 + $0xb8] sm:$0xff] %v360_v36  ;;  %v251_v38 = vadd.f32 %v250_v37, %v675_v49  ;;  %v363_v39 = vpop.f32.mrb[12].mxu1  ;;  %v252_v40 = vpop.f32.mrb[13].mxu0 }
 0x148   :  { %v364_v41 = vadd.f32 %v363_v39, %v677_v50  ;;  %v253_v42 = vadd.f32 %v252_v40, %v679_v51  ;;  %v365_v43 = vpop.f32.mrb[13].mxu1 }
 0x149   :  { %398 = vst [vmem:[#allocation8 + $0xc0] sm:$0xff] %v251_v38  ;;  %v366_v44 = vadd.f32 %v365_v43, %v681_v52 }
 0x14a   :  { %400 = vst [vmem:[#allocation8 + $0xd0] sm:$0xff] %v364_v41  ;;  %399 = vst [vmem:[#allocation8 + $0xc8] sm:$0xff] %v253_v42  ;;  %v256_v45 = vpop.f32.mrb[14].mxu0 }
 0x14b   :  { %401 = vst [vmem:[#allocation8 + $0xd8] sm:$0xff] %v366_v44  ;;  %v257_v46 = vadd.f32 %v256_v45, %v675_v49  ;;  %v369_v47 = vpop.f32.mrb[14].mxu1  ;;  %v258_v48 = vpop.f32.mrb[15].mxu0 }
 0x14c   :  { %v370_v53 = vadd.f32 %v369_v47, %v677_v50  ;;  %v259_v0 = vadd.f32 %v258_v48, %v679_v51  ;;  %v371_v54 = vpop.f32.mrb[15].mxu1 }
 0x14d   :  { %402 = vst [vmem:[#allocation8 + $0xe0] sm:$0xff] %v257_v46  ;;  %v372_v55 = vadd.f32 %v371_v54, %v681_v52 }
 0x14e   :  { %404 = vst [vmem:[#allocation8 + $0xf0] sm:$0xff] %v370_v53  ;;  %403 = vst [vmem:[#allocation8 + $0xe8] sm:$0xff] %v259_v0 }
 0x14f   :  { %405 = vst [vmem:[#allocation8 + $0xf8] sm:$0xff] %v372_v55 }
 0x150   :  { %574 = shalt.err (!%p571_p0)
}
 0x151   :  { %s575_s29 = scalar_lea.hbm %s733_s3, 4096 }
 0x152   :  { %p576_p1 = scmp.ne.s32.totalorder %s733_s3, %s575_s29  ;;  %p579_p2 = scmp.lt.u32.totalorder %s575_s29, %s733_s3 }
 0x154   :  { %p581_p3 = pnand %p579_p2, %p576_p1 }
 0x156   :  { %584 = shalt.err (!%p581_p3)
}
 0x157   :  { %417 = dma.vmem_to_hbm [thread:$0]  %s412_s25, 4096, %s733_s3, [#allocation4], %s592_s22, %s592_s22, %s593_s23  }
 0x158   :  { %589 = dma.done.wait [#allocation4], 4096  }
 0x159   :  { %590 = vsyncadd [#allocation4], 4294963200 }
 0x15a   :  { %421 = vsyncpa [#allocation3], 1 }
 0x15b   :  { %422 = vsyncpa [#allocation6], 1 }
 0x15c   :  { %423 = vsyncpa [#allocation4], 1 }

</bundles_post_ra>
